<compile_context>
chip_gen: v7x
topology: tpu7x:2x2x1
jax: 0.10.0
libtpu: 0.0.40
codegen_flags: <defaults>
</compile_context>

<pallas_src>
import functools

import jax
import jax.numpy as jnp
from jax.experimental import pallas as pl
from jax.experimental.pallas import tpu as pltpu


def _film_seq_kernel(n_blocks, hidden_activation, x_ref, gamma_ref, beta_ref, o_ref):
    """FiLM modulation stream; gamma/beta already computed by the wrapper.

    x_ref:     (1, C, HW_tile)  lane-dense feature-map tile (one batch element)
    gamma_ref: (n, 1, C, 1)     per-(block, channel) gamma for this batch element
    beta_ref:  (n, 1, C, 1)
    o_ref:     (1, C, HW_tile)
    """
    out = x_ref[0].astype(jnp.float32)                     # (C, HW_tile)
    for i in range(n_blocks):
        g = gamma_ref[i, 0]                                # (C, 1) broadcast over lanes
        b = beta_ref[i, 0]                                 # (C, 1)
        out = (1.0 + g) * out + b
        if i < n_blocks - 1 and hidden_activation == 'relu':
            out = jnp.maximum(out, 0.0)
        # hidden_activation == 'identity' (module default) -> nothing to do
    o_ref[0] = out.astype(o_ref.dtype)


def _choose_hw_tile(hw, max_tile=4096):
    """Largest lane-dense (multiple-of-128) tile dividing hw, capped at max_tile."""
    if hw <= max_tile or hw % 128 != 0:
        return hw
    tile = max_tile - (max_tile % 128)
    while hw % tile != 0:
        tile -= 128
    return max(tile, 128)


def film_block_sequence(x_nchw, film_inputs, params, hidden_activation='identity'):
    """Pallas implementation of FiLMBlockSequence.forward.

    x_nchw:       (B, C, H, W) float32
    film_inputs:  list of (B, E_i) float32
    params:       list of dicts {'wg': (E_i, C), 'bg': (1, C), 'wb': (E_i, C), 'bb': (1, C)}
                  (weights stored transposed relative to torch.nn.Linear)
    """
    assert isinstance(film_inputs, list)
    assert len(film_inputs) == len(params)
    B, C, H, W = x_nchw.shape
    HW = H * W
    n = len(params)

    if n == 0:
        return x_nchw

    # Pure reshape of the NCHW buffer (no transpose, no extra HBM pass).
    x = x_nchw.reshape(B, C, HW)

    # Hoisted gamma/beta: one tiny batched matmul per block, done by XLA.
    gammas = jnp.stack(
        [jnp.dot(f, p['wg'], preferred_element_type=jnp.float32) + p['bg']
         for f, p in zip(film_inputs, params)])            # (n, B, C)
    betas = jnp.stack(
        [jnp.dot(f, p['wb'], preferred_element_type=jnp.float32) + p['bb']
         for f, p in zip(film_inputs, params)])            # (n, B, C)
    gammas = gammas.astype(jnp.float32).reshape(n, B, C, 1)
    betas = betas.astype(jnp.float32).reshape(n, B, C, 1)

    hw_tile = _choose_hw_tile(HW)
    n_hw_tiles = HW // hw_tile

    kernel = functools.partial(_film_seq_kernel, n, hidden_activation)

    cost = pl.CostEstimate(
        flops=2 * n * B * C * HW,
        transcendentals=0,
        bytes_accessed=2 * B * C * HW * 4 + 2 * n * B * C * 4,
    )

    out = pl.pallas_call(
        kernel,
        out_shape=jax.ShapeDtypeStruct((B, C, HW), x.dtype),
        grid=(B, n_hw_tiles),
        in_specs=[
            pl.BlockSpec((1, C, hw_tile), lambda b, t: (b, 0, t)),
            pl.BlockSpec((n, 1, C, 1), lambda b, t: (0, b, 0, 0)),
            pl.BlockSpec((n, 1, C, 1), lambda b, t: (0, b, 0, 0)),
        ],
        out_specs=pl.BlockSpec((1, C, hw_tile), lambda b, t: (b, 0, t)),
        compiler_params=pltpu.CompilerParams(
            dimension_semantics=("parallel", "parallel")),
        cost_estimate=cost,
    )(x, gammas, betas)

    return out.reshape(B, C, H, W)


def reference_film_block_sequence(x_nchw, film_inputs, params, hidden_activation='identity'):
    """Pure-JAX reference matching the PyTorch semantics (NCHW)."""
    out = x_nchw
    n = len(params)
    for i, (f, p) in enumerate(zip(film_inputs, params)):
        gamma = f @ p['wg'] + p['bg']          # (B, C)
        beta = f @ p['wb'] + p['bb']           # (B, C)
        out = (1.0 + gamma)[:, :, None, None] * out + beta[:, :, None, None]
        if i < n - 1 and hidden_activation == 'relu':
            out = jnp.maximum(out, 0.0)
    return out


def init_params(key, film_emb_dim_list, num_filters, init_w=0.001):
    """Deterministic init matching rlkit Mlp(hidden_sizes=[], init_w=0.001):
    single Linear layer, weight & bias ~ U(-init_w, init_w)."""
    params = []
    for emb_dim in film_emb_dim_list:
        key, k0, k1, k2, k3 = jax.random.split(key, 5)
        params.append({
            'wg': jax.random.uniform(k0, (emb_dim, num_filters), jnp.float32, -init_w, init_w),
            'bg': jax.random.uniform(k1, (1, num_filters), jnp.float32, -init_w, init_w),
            'wb': jax.random.uniform(k2, (emb_dim, num_filters), jnp.float32, -init_w, init_w),
            'bb': jax.random.uniform(k3, (1, num_filters), jnp.float32, -init_w, init_w),
        })
    return params


if __name__ == "__main__":
    # Small shapes consistent with the module: 2 FiLM blocks, C=4 filters, 16x16 feature map.
    B, C, H, W = 2, 4, 16, 16
    film_emb_dim_list = [8, 16]

    key = jax.random.PRNGKey(0)
    kx, kf1, kf2, kp = jax.random.split(key, 4)

    x = jax.random.normal(kx, (B, C, H, W), jnp.float32)
    film_inputs = [
        jax.random.normal(kf1, (B, film_emb_dim_list[0]), jnp.float32),
        jax.random.normal(kf2, (B, film_emb_dim_list[1]), jnp.float32),
    ]
    params = init_params(kp, film_emb_dim_list, num_filters=C)

    out = film_block_sequence(x, film_inputs, params, hidden_activation='identity')
    out = jax.block_until_ready(out)

    ref = reference_film_block_sequence(x, film_inputs, params, hidden_activation='identity')
    assert out.shape == (B, C, H, W)
    assert jnp.allclose(out, ref, atol=1e-5, rtol=1e-5), "Pallas output mismatch vs reference"

    # Also exercise the 'relu' inter-block activation path.
    out_r = film_block_sequence(x, film_inputs, params, hidden_activation='relu')
    out_r = jax.block_until_ready(out_r)
    ref_r = reference_film_block_sequence(x, film_inputs, params, hidden_activation='relu')
    assert jnp.allclose(out_r, ref_r, atol=1e-5, rtol=1e-5), "Pallas relu-path mismatch vs reference"

    print("KERNEL_OK")
</pallas_src>

<mosaic_0001>
module attributes {stable_mosaic.version = 11 : i64} {
  func.func @_film_seq_kernel(%arg0: i32, %arg1: i32, %arg2: memref<1x4x256xf32, #tpu.memory_space<vmem>>, %arg3: memref<2x1x4x1xf32, #tpu.memory_space<vmem>>, %arg4: memref<2x1x4x1xf32, #tpu.memory_space<vmem>>, %arg5: memref<1x4x256xf32, #tpu.memory_space<vmem>>) attributes {dimension_semantics = [#tpu.dimension_semantics<parallel>, #tpu.dimension_semantics<parallel>], iteration_bounds = array<i64: 2, 1>, scalar_prefetch = 0 : i64, scratch_operands = 0 : i64, tpu.core_type = #tpu.core_type<tc>, window_params = [{transform_indices = @transform_0, window_bounds = array<i64: 1, 4, 256>}, {transform_indices = @transform_1, window_bounds = array<i64: 2, 1, 4, 1>}, {transform_indices = @transform_2, window_bounds = array<i64: 2, 1, 4, 1>}, {transform_indices = @transform_3, window_bounds = array<i64: 1, 4, 256>}]} {
    %c0 = arith.constant 0 : index
    %c0_0 = arith.constant 0 : index
    %c0_1 = arith.constant 0 : index
    %0 = vector.load %arg2[%c0, %c0_0, %c0_1] : memref<1x4x256xf32, #tpu.memory_space<vmem>>, vector<1x4x256xf32>
    %1 = vector.shape_cast %0 : vector<1x4x256xf32> to vector<4x256xf32>
    %c0_2 = arith.constant 0 : index
    %c0_3 = arith.constant 0 : index
    %c0_4 = arith.constant 0 : index
    %c0_5 = arith.constant 0 : index
    %2 = vector.load %arg3[%c0_2, %c0_3, %c0_4, %c0_5] : memref<2x1x4x1xf32, #tpu.memory_space<vmem>>, vector<1x1x4x1xf32>
    %3 = vector.shape_cast %2 : vector<1x1x4x1xf32> to vector<4x1xf32>
    %c0_6 = arith.constant 0 : index
    %c0_7 = arith.constant 0 : index
    %c0_8 = arith.constant 0 : index
    %c0_9 = arith.constant 0 : index
    %4 = vector.load %arg4[%c0_6, %c0_7, %c0_8, %c0_9] : memref<2x1x4x1xf32, #tpu.memory_space<vmem>>, vector<1x1x4x1xf32>
    %5 = vector.shape_cast %4 : vector<1x1x4x1xf32> to vector<4x1xf32>
    %cst = arith.constant 1.000000e+00 : f32
    %6 = vector.broadcast %cst : f32 to vector<4x1xf32>
    %7 = arith.addf %6, %3 : vector<4x1xf32>
    %8 = vector.broadcast %7 : vector<4x1xf32> to vector<4x256xf32>
    %9 = arith.mulf %8, %1 : vector<4x256xf32>
    %10 = vector.broadcast %5 : vector<4x1xf32> to vector<4x256xf32>
    %11 = arith.addf %9, %10 : vector<4x256xf32>
    %c1 = arith.constant 1 : index
    %c0_10 = arith.constant 0 : index
    %c0_11 = arith.constant 0 : index
    %c0_12 = arith.constant 0 : index
    %12 = vector.load %arg3[%c1, %c0_10, %c0_11, %c0_12] : memref<2x1x4x1xf32, #tpu.memory_space<vmem>>, vector<1x1x4x1xf32>
    %13 = vector.shape_cast %12 : vector<1x1x4x1xf32> to vector<4x1xf32>
    %c1_13 = arith.constant 1 : index
    %c0_14 = arith.constant 0 : index
    %c0_15 = arith.constant 0 : index
    %c0_16 = arith.constant 0 : index
    %14 = vector.load %arg4[%c1_13, %c0_14, %c0_15, %c0_16] : memref<2x1x4x1xf32, #tpu.memory_space<vmem>>, vector<1x1x4x1xf32>
    %15 = vector.shape_cast %14 : vector<1x1x4x1xf32> to vector<4x1xf32>
    %cst_17 = arith.constant 1.000000e+00 : f32
    %16 = vector.broadcast %cst_17 : f32 to vector<4x1xf32>
    %17 = arith.addf %16, %13 : vector<4x1xf32>
    %18 = vector.broadcast %17 : vector<4x1xf32> to vector<4x256xf32>
    %19 = arith.mulf %18, %11 : vector<4x256xf32>
    %20 = vector.broadcast %15 : vector<4x1xf32> to vector<4x256xf32>
    %21 = arith.addf %19, %20 : vector<4x256xf32>
    %c0_18 = arith.constant 0 : index
    %c0_19 = arith.constant 0 : index
    %c0_20 = arith.constant 0 : index
    %22 = vector.load %arg5[%c0_18, %c0_19, %c0_20] : memref<1x4x256xf32, #tpu.memory_space<vmem>>, vector<1x4x256xf32>
    %23 = vector.shape_cast %22 : vector<1x4x256xf32> to vector<4x256xf32>
    %24 = vector.shape_cast %21 : vector<4x256xf32> to vector<1x4x256xf32>
    tpu.vector_store %arg5[%c0_18, %c0_19, %c0_20], %24 {strides = array<i32>} : memref<1x4x256xf32, #tpu.memory_space<vmem>>, vector<1x4x256xf32>,
    return
  }
  func.func @transform_0(%arg0: i32, %arg1: i32) -> (i32, i32, i32) {
    %c0_i32 = arith.constant 0 : i32
    %c0_i32_0 = arith.constant 0 : i32
    return %arg0, %c0_i32, %arg1 : i32, i32, i32
  }
  func.func @transform_1(%arg0: i32, %arg1: i32) -> (i32, i32, i32, i32) {
    %c0_i32 = arith.constant 0 : i32
    %c0_i32_0 = arith.constant 0 : i32
    %c0_i32_1 = arith.constant 0 : i32
    %c0_i32_2 = arith.constant 0 : i32
    return %c0_i32, %arg0, %c0_i32_0, %c0_i32_1 : i32, i32, i32, i32
  }
  func.func @transform_2(%arg0: i32, %arg1: i32) -> (i32, i32, i32, i32) {
    %c0_i32 = arith.constant 0 : i32
    %c0_i32_0 = arith.constant 0 : i32
    %c0_i32_1 = arith.constant 0 : i32
    %c0_i32_2 = arith.constant 0 : i32
    return %c0_i32, %arg0, %c0_i32_0, %c0_i32_1 : i32, i32, i32, i32
  }
  func.func @transform_3(%arg0: i32, %arg1: i32) -> (i32, i32, i32) {
    %c0_i32 = arith.constant 0 : i32
    %c0_i32_0 = arith.constant 0 : i32
    return %arg0, %c0_i32, %arg1 : i32, i32, i32
  }
}

</mosaic_0001>

<bundles_post_ra>
// kernel: tpu_custom_call.1
= control target key start
LH: loop header
LB: loop body
LE: loop exit
PB: predicated region body
PF: predicated region fallthrough
CT: control target
= control target key end

     0   :  { %8 = vsyncpa [#allocation5], 0  ;;  %s832_s0 = inlined_call_operand.vmem [shape: f32[2,4,256], index: 0, kind: input, shape index: {}]   ;;  %s833_s1 = inlined_call_operand.vmem [shape: f32[2,2,4,1], index: 1, kind: input, shape index: {}]   ;;  %s834_s2 = inlined_call_operand.vmem [shape: f32[2,2,4,1], index: 2, kind: input, shape index: {}]   ;;  %s835_s3 = inlined_call_operand.hbm [shape: f32[2,4,256], index: 3, kind: output, shape index: {}]  }
   0x1   :  { %10 = vsyncpa [#allocation5 + $0x1], 0  ;;  %s688_s12 = smov 0   ;;  %s690_s13 = smov 0  }
   0x2   :  { %s692_s14 = smov 0   ;;  %s694_s15 = smov 0  }
   0x3   :  { %s696_s16 = smov 0   ;;  %s698_s17 = smov 0  }
   0x4 LB: > { %s504_s18 = sadd.s32 4294967295, %s664_s17   ;;  %s505_s19 = sadd.s32 4294967294, %s664_s17   ;;  %s664_s17 = sphi %s698_s17, %s16_s17   ;;  %s660_s16 = sphi %s696_s16, %s843_s16   ;;  %s656_s15 = sphi %s694_s15, %s842_s15   ;;  %s652_s14 = sphi %s692_s14, %s841_s14   ;;  %s648_s13 = sphi %s690_s13, %s840_s13   ;;  %s644_s12 = sphi %s688_s12, %s839_s12  }
   0x5   : > { %s28_s20 = sadd.s32 1, %s660_s16  ;;  %s63_s21 = sadd.s32 1, %s652_s14 }
   0x6   : > { %p30_p0 = scmp.ge.s32.totalorder %s28_s20, 2  ;;  %p70_p1 = scmp.ne.s32.totalorder %s652_s14, %s648_s13 }
   0x7   : > { %p71_p2 = scmp.eq.s32.totalorder %s664_s17, 0  ;;  %p128_p3 = scmp.eq.s32.totalorder %s504_s18, 1 }
   0x8   : > { %s845_s20 = smov (%p30_p0, %s28_s20), 0  ;;  %p133_p6 = scmp.ne.s32.totalorder %s648_s13, %s644_s12 }
   0x9   : > { %p727_p4 = por %p71_p2, %p70_p1  ;;  %p731_p5 = por %p128_p3, %p70_p1 }
   0xa   : > { %s60_s24 = ssub.s32 %s660_s16, %s845_s20  ;;  %p134_p8 = scmp.eq.s32.totalorder %s505_s19, 1 }
   0xb   : > { %p61_p7 = scmp.eq.s32.totalorder %s60_s24, 0  ;;  %p507_p10 = scmp.ge.s32.totalorder %s664_s17, 2 }
   0xc   : > { %p742_p9 = por %p134_p8, %p133_p6 }
   0xd   : > { %s740_s25 = scalar_select %p61_p7, %s652_s14, %s63_s21  }
   0xe   : > { %150 = sbr.rel (%p507_p10) target bundleno = 35 (0x23), region = 16 }
  0x15   : > { %166 = sbr.rel (!%p727_p4) target bundleno = 28 (0x1c), region = 24  ;;  %s168_s27 = sand.u32 (%p727_p4), 1, %s652_s14  }
  0x16   : > { %s509_s28 = sshll.u32 (%p727_p4), %s660_s16, 2  ;;  %s508_s29 = sshll.u32 (%p727_p4), %s168_s27, 3 }
  0x17   : > { %s172_s5 = scalar_lea.vmem (%p727_p4), %s833_s1, %s509_s28  ;;  %s170_s6 = scalar_lea.vmem (%p727_p4), [#allocation2], %s508_s29 }
  0x18   : > { %v188_v0 = vld [vmem:[%s172_s5] sm:$0xf] (%p727_p4)  ;;  %v190_v1 = vld [vmem:[%s172_s5 + $0x8] sm:$0xf] (%p727_p4) }
  0x19   : > { %189 = vst [vmem:[%s170_s6] sm:$0xf] (%p727_p4), %v188_v0  ;;  %191 = vst [vmem:[%s170_s6 + $0x4] sm:$0xf] (%p727_p4), %v190_v1 }
  0x1c PF: > { %218 = sbr.rel (!%p727_p4) target bundleno = 35 (0x23), region = 65  ;;  %s220_s7 = sand.u32 (%p727_p4), 1, %s652_s14  }
  0x1d   : > { %s511_s8 = sshll.u32 (%p727_p4), %s660_s16, 2  ;;  %s510_s9 = sshll.u32 (%p727_p4), %s220_s7, 3 }
  0x1e   : > { %s224_s18 = scalar_lea.vmem (%p727_p4), %s834_s2, %s511_s8  ;;  %s222_s19 = scalar_lea.vmem (%p727_p4), [#allocation3], %s510_s9 }
  0x1f   : > { %v240_v2 = vld [vmem:[%s224_s18] sm:$0xf] (%p727_p4)  ;;  %v242_v3 = vld [vmem:[%s224_s18 + $0x8] sm:$0xf] (%p727_p4) }
  0x20   : > { %241 = vst [vmem:[%s222_s19] sm:$0xf] (%p727_p4), %v240_v2  ;;  %243 = vst [vmem:[%s222_s19 + $0x4] sm:$0xf] (%p727_p4), %v242_v3 }
  0x23 PF: > { %p512_p11 = scmp.ge.s32.totalorder %s664_s17, 1  ;;  %p269_p12 = scmp.lt.s32.totalorder %s664_s17, 3 }
  0x25   : > { %p270_p13 = pnand %p512_p11, %p269_p12 }
  0x26   : > { %s276_s21 = sand.u32 (!%p270_p13), 1, %s648_s13   ;;  %v666_v4 = vmov (!%p270_p13), 0   ;;  %p320_p0 = scmp.lt.s32.totalorder (!%p270_p13), %s656_s15, 1 }
  0x27   : > { %273 = sbr.rel (%p270_p13) target bundleno = 198 (0xc6), region = 106  ;;  %584 = vset.pattern.permute.xlu1 (!%p270_p13), %v666_v4  ;;  %583 = vset.pattern.permute.xlu0 (!%p270_p13), %v666_v4  ;;  %s768_s22 = sshll.u32 (!%p270_p13), %s276_s21, 3 }
  0x28   : > { %s278_s24 = scalar_lea.vmem (!%p270_p13), [#allocation2], %s768_s22  ;;  %s285_s27 = scalar_lea.vmem (!%p270_p13), [#allocation3], %s768_s22 }
  0x29   : > { %v518_v5 = vld [vmem:[%s278_s24 + $0x4] sm:$0xf] (!%p270_p13)  ;;  %v331_v6 = vld [vmem:[%s278_s24] sm:$0xf] (!%p270_p13)  ;;  %v519_v9 = vld [vmem:[%s285_s27 + $0x4] sm:$0xf] (!%p270_p13) }
  0x2a   : > { %v355_v7 = vadd.f32 (!%p270_p13), 1.0, %v518_v5  ;;  %v333_v8 = vadd.f32 (!%p270_p13), 1.0, %v331_v6  ;;  %v332_v10 = vld [vmem:[%s285_s27] sm:$0xf] (!%p270_p13)  ;;  %s526_s6 = sshll.u32 (!%p270_p13), %s656_s15, 7  ;;  %s318_s7 = scalar_lea.vmem (!%p270_p13), [#allocation4], %s768_s22 }
  0x2b   : > { %s392_s8 = sshll.u32 (!%p270_p13), %s318_s7, 4  ;;  %s782_s11 = scalar_lea.hbm (!%p270_p13), %s835_s3, %s526_s6  ;;  %s784_s8 = int_to_ptr.vmem [resolvable:$true] %s392_s8 }
  0x2c   : > { %358 = vperm.xlu1 (!%p270_p13), %584, %v355_v7   ;;  %336 = vperm.xlu0 (!%p270_p13), %583, %v333_v8   ;;  %s376_s18 = scalar_lea.sflag (!%p270_p13), [#allocation5], %s276_s21  ;;  %s586_s19 = scalar_lea.vmem (!%p270_p13), %s784_s8, 128 }
  0x2d   : > { %p587_p1 = scmp.ne.s32.totalorder (!%p270_p13), %s784_s8, %s586_s19 }
  0x2e   : > { %s321_s28 = scalar_select %p320_p0, %s656_s15, 1 }
  0x2f   : > { %p588_p2 = pnand %p587_p1, %p731_p5  ;;  %s667_s15 = smov [#allocation4]  }
  0x30   : > { %365 = vperm.xlu1 %584, %v519_v9   ;;  %346 = vperm.xlu0 %583, %v332_v10   ;;  %s525_s29 = sshll.u32 %s321_s28, 3  ;;  %s590_s22 = sshll.u32 %s667_s15, 4  ;;  %s591_s22 = int_to_ptr.vmem [resolvable:$false] %s590_s22 }
  0x31   : > { %s327_s5 = scalar_lea.vmem %s832_s0, %s525_s29  ;;  %p589_p3 = pneg %p588_p2 }
  0x32   : > { %v330_v11 = vld [vmem:[%s327_s5] sm:$0xff]  ;;  %s592_s24 = scalar_lea.vmem %s591_s22, 256  ;;  %p593_p4 = scmp.lt.s32.totalorder %s784_s8, %s591_s22 }
  0x33   : > { %v340_v12 = vcombine.high %v330_v11, %v330_v11  ;;  %p594_p6 = scmp.lt.s32.totalorder %s592_s24, %s586_s19 }
  0x35   : > { %p595_p7 = por %p594_p6, %p593_p4 }
  0x37   : > { %p596_p8 = pnand %p595_p7, %p589_p3 }
  0xab   : > { %v337_v13 = vpop.permute.xlu0 %336  ;;  %v359_v14 = vpop.permute.xlu1 %358 }
  0xac   : > { %v342_v15 = vmul.f32 %v337_v13, %v330_v11  ;;  %v343_v16 = vmul.f32 %v340_v12, %v337_v13 }
  0xaf   : > { %v347_v17 = vpop.permute.xlu0 %346  ;;  %v366_v22 = vpop.permute.xlu1 %365 }
  0xb0   : > { %v349_v18 = vadd.f32 %v347_v17, %v342_v15  ;;  %v350_v19 = vadd.f32 %v347_v17, %v343_v16 }
  0xb2   : > { %v361_v20 = vmul.f32 %v359_v14, %v349_v18  ;;  %v362_v21 = vmul.f32 %v359_v14, %v350_v19 }
  0xb4   : > { %v368_v23 = vadd.f32 %v366_v22, %v361_v20  ;;  %v369_v24 = vadd.f32 %v366_v22, %v362_v21 }
  0xb6   : > { %v372_v25 = vcombine.low %v368_v23, %v369_v24 }
  0xb8   : > { %374 = vst [vmem:[%s318_s7] sm:$0xff] %v372_v25 }
  0xb9   : > { %599 = shalt.err (!%p596_p8)
}
  0xba   : > { %s600_s21 = scalar_lea.hbm %s782_s11, 128  ;;  %s604_s29 = scalar_lea.hbm %s835_s3, 256 }
  0xbb   : > { %p601_p11 = scmp.ne.s32.totalorder %s782_s11, %s600_s21  ;;  %p605_p0 = scmp.lt.u32.totalorder %s782_s11, %s835_s3 }
  0xbc   : > { %p606_p1 = scmp.lt.u32.totalorder %s604_s29, %s600_s21  ;;  %p608_p3 = scmp.lt.u32.totalorder %s600_s21, %s782_s11 }
  0xbd   : > { %p602_p12 = pnand %p601_p11, %p731_p5 }
  0xbe   : > { %p607_p2 = por %p606_p1, %p605_p0 }
  0xbf   : > { %p603_p13 = pneg %p602_p12 }
  0xc0   : > { %p609_p4 = por %p608_p3, %p607_p2 }
  0xc2   : > { %p610_p6 = pnand %p609_p4, %p603_p13 }
  0xc4   : > { %613 = shalt.err (!%p610_p6)
}
  0xc5   : > { %527 = dma.vmem_to_hbm [thread:$0]  (%p731_p5), %s784_s8, 128, %s782_s11, %s376_s18  }
  0xc6 PF: > { %s404_s5 = sand.u32 1, %s644_s12   ;;  %p530_p7 = pnand %p507_p10, %p742_p9 }
  0xc7   : > { %s405_s6 = scalar_lea.sflag [#allocation5], %s404_s5 }
  0xc8   : > { %639 = dma.done.wait (!%p530_p7), %s405_s6, 128  }
  0xc9   : > { %641 = vsyncadd (!%p530_p7), %s405_s6, 4294967168  ;;  %s16_s17 = sadd.s32 1, %s664_s17   ;;  %s839_s12 = smov %s648_s13 }
  0xca   : > { %p13_p8 = scmp.ge.s32.totalorder %s16_s17, 4   ;;  %s840_s13 = smov %s652_s14 }
  0xcb   : > { %s841_s14 = smov %s740_s25  ;;  %s842_s15 = smov %s660_s16 }
  0xcc   : > { %s843_s16 = smov %s845_s20  ;;  %15 = sbr.rel (!%p13_p8) target bundleno = 4 (0x4), region = 167 }
  0xd3   :  { %410 = vsyncpa [#allocation5], 1 }
  0xd4   :  { %412 = vsyncpa [#allocation5 + $0x1], 1 }

</bundles_post_ra>
